<compile_context>
chip_gen: v5e
topology: v5e:2x2
jax: 0.10.0
libtpu: 0.0.40
codegen_flags: <defaults>
</compile_context>

<pallas_src>
import jax
import jax.numpy as jnp
from jax.experimental import pallas as pl
from jax.experimental.pallas import tpu as pltpu


def _round_up(v, m):
    return (v + m - 1) // m * m


def _cdiv(a, b):
    return -(-a // b)


def _orthogonal(key, rows, cols, gain):
    """Orthogonal init in the spirit of torch.nn.init.orthogonal_ (shape
    [rows, cols], gain applied)."""
    a = jax.random.normal(key, (max(rows, cols), min(rows, cols)), dtype=jnp.float32)
    q, r = jnp.linalg.qr(a)
    d = jnp.sign(jnp.diagonal(r))
    d = jnp.where(d == 0, 1.0, d)          # guard against exactly-zero diagonal
    q = q * d[None, :]
    if rows < cols:
        q = q.T
    return gain * q[:rows, :cols]


def _mlpbase_kernel(x_ref, c_ref, w1x_ref, w1c_ref, b1_ref, w2_ref, b2_ref,
                    wcl_ref, bcl_ref, out_ref):
    """Fused critic+actor MLP. Lanes [0,H) = actor branch, [H,2H) = critic."""
    H = out_ref.shape[-1] // 2

    xb = x_ref[...].astype(jnp.bfloat16)       # [TM, num_inputs]
    cb = c_ref[...].astype(jnp.bfloat16)       # [TM, cond_size]

    # ---- fused layer 1 (bf16 MXU, f32 accumulate): two partial matmuls over
    # the real feature widths; the critic columns of w1c are zero so the critic
    # branch ignores the condition lanes, matching the reference module.
    h1 = (jnp.dot(xb, w1x_ref[...], preferred_element_type=jnp.float32)
          + jnp.dot(cb, w1c_ref[...], preferred_element_type=jnp.float32)
          + b1_ref[...])
    h1 = jnp.tanh(h1)                          # [TM, 2H] f32

    # ---- fused layer 2: block-diagonal weight keeps the branches independent.
    h2 = jnp.tanh(
        jnp.dot(h1.astype(jnp.bfloat16), w2_ref[...],
                preferred_element_type=jnp.float32) + b2_ref[...])   # [TM, 2H]

    # ---- critic_linear (H -> 1): VPU multiply + XLU lane reduce.  wcl is zero
    # over the actor lanes so no slicing is needed.
    value = jnp.sum(h2 * wcl_ref[...], axis=-1, keepdims=True) + bcl_ref[...]  # [TM,1]

    # ---- single lane-dense bf16 store: lanes [0,H) actor, lanes [H,2H) value.
    col = jax.lax.broadcasted_iota(jnp.int32, h2.shape, 1)
    out_ref[...] = jnp.where(col < H, h2, value).astype(out_ref.dtype)


def mlpbase_forward(x, rnn_hxs, condition_state, kparams, *, tile_m=1024):
    """x: [S, B, num_inputs], condition_state: [S, B, cond], rnn_hxs: [B, 1].
    Returns (value [S,B,1], hidden_actor [S,B,H], rnn_hxs)."""
    S, B, num_inputs = x.shape
    cond_size = condition_state.shape[-1]
    H = kparams["b2"].shape[-1] // 2
    OUT = 2 * H                                 # packed output lane width (128 for H=64)

    M = S * B
    x2 = x.reshape(M, num_inputs)               # free reshape, no packing pass
    c2 = condition_state.reshape(M, cond_size)

    # Rows per tile: multiple of 16 (bf16 sublane pairing).  Aim for >=2 grid
    # steps so v7x's second TensorCore gets work, and pick TM near a divisor of
    # M so the (masked) last tile wastes little work.
    target_tiles = max(2, _cdiv(M, tile_m))
    TM = _round_up(_cdiv(M, target_tiles), 16)
    TM = min(TM, _round_up(M, 16))
    num_tiles = _cdiv(M, TM)

    const = lambda shape: pl.BlockSpec(shape, lambda i: (0, 0))  # VMEM-resident weights

    flops = 2 * M * ((num_inputs + cond_size) * OUT + OUT * OUT)
    transcendentals = 2 * M * OUT
    bytes_accessed = (M * (num_inputs + cond_size) * 4          # f32 inputs
                      + M * OUT * 2                             # bf16 packed output
                      + (kparams["w1x"].size + kparams["w1c"].size
                         + kparams["w2"].size) * 2
                      + (kparams["b1"].size + kparams["b2"].size
                         + kparams["wcl"].size + kparams["bcl"].size) * 4)

    out = pl.pallas_call(
        _mlpbase_kernel,
        out_shape=jax.ShapeDtypeStruct((M, OUT), jnp.bfloat16),
        grid=(num_tiles,),
        in_specs=[
            pl.BlockSpec((TM, num_inputs), lambda i: (i, 0)),   # x rows (pipelined)
            pl.BlockSpec((TM, cond_size), lambda i: (i, 0)),    # condition rows
            const((num_inputs, OUT)),                           # fused layer-1 (x rows)
            const((cond_size, OUT)),                            # fused layer-1 (cond rows)
            const((1, OUT)),                                    # fused layer-1 bias
            const((OUT, OUT)),                                  # fused block-diag layer-2
            const((1, OUT)),                                    # fused layer-2 bias
            const((1, OUT)),                                    # critic_linear row (padded)
            const((1, 1)),                                      # critic_linear bias
        ],
        out_specs=pl.BlockSpec((TM, OUT), lambda i: (i, 0)),
        compiler_params=pltpu.CompilerParams(
            dimension_semantics=("parallel",)),
        cost_estimate=pl.CostEstimate(flops=flops,
                                      transcendentals=transcendentals,
                                      bytes_accessed=bytes_accessed),
    )(x2, c2,
      kparams["w1x"], kparams["w1c"], kparams["b1"],
      kparams["w2"], kparams["b2"],
      kparams["wcl"], kparams["bcl"])

    # Downstream consumers could take the packed bf16 slab directly; here we
    # unpack to the module's f32 (value, hidden_actor, rnn_hxs) interface.
    value = out[:, H:H + 1].astype(jnp.float32).reshape(S, B, 1)
    hidden_actor = out[:, :H].astype(jnp.float32).reshape(S, B, H)
    return value, hidden_actor, rnn_hxs


def make_params(key, num_inputs, cond_size, hidden_size):
    """Logical (f32, torch-equivalent) parameters. Weights stored as [in, out]."""
    gain = jnp.sqrt(2.0)
    ks = jax.random.split(key, 5)
    wc1 = _orthogonal(ks[0], hidden_size, num_inputs, gain).T                 # [in, H]
    wc2 = _orthogonal(ks[1], hidden_size, hidden_size, gain).T                # [H, H]
    wcl = _orthogonal(ks[2], 1, hidden_size, gain).T                          # [H, 1]
    wa1 = _orthogonal(ks[3], hidden_size, cond_size + num_inputs, gain).T     # [cond+in, H]
    wa2 = _orthogonal(ks[4], hidden_size, hidden_size, gain).T                # [H, H]
    zeros = lambda *s: jnp.zeros(s, dtype=jnp.float32)
    return dict(
        wc1=wc1, bc1=zeros(1, hidden_size),
        wc2=wc2, bc2=zeros(1, hidden_size),
        wcl=wcl, bcl=zeros(1, 1),
        wa1=wa1, ba1=zeros(1, hidden_size),
        wa2=wa2, ba2=zeros(1, hidden_size),
    )


def pack_params(params, num_inputs, cond_size):
    """Kernel-ready fused parameters.

    The actor and critic branches are fused into a single 2H-wide path
    (actor lanes [0,H), critic lanes [H,2H)):
      w1x [in, 2H]   : actor x-rows | critic layer-1
      w1c [cond, 2H] : actor condition-rows | zeros (critic ignores condition)
      w2  [2H, 2H]   : block-diagonal (wa2 | wc2)
      wcl [1, 2H]    : zeros over actor lanes | critic_linear row
    Matmul weights are bf16; biases / wcl stay f32."""
    bf = jnp.bfloat16
    H = params["wc1"].shape[1]
    wa1, wc1 = params["wa1"], params["wc1"]

    w1x = jnp.concatenate([wa1[cond_size:], wc1], axis=1).astype(bf)          # [in, 2H]
    w1c = jnp.concatenate([wa1[:cond_size],
                           jnp.zeros((cond_size, H), jnp.float32)],
                          axis=1).astype(bf)                                  # [cond, 2H]
    b1 = jnp.concatenate([params["ba1"], params["bc1"]], axis=1)              # [1, 2H]

    w2 = jnp.zeros((2 * H, 2 * H), jnp.float32)
    w2 = w2.at[:H, :H].set(params["wa2"]).at[H:, H:].set(params["wc2"])
    b2 = jnp.concatenate([params["ba2"], params["bc2"]], axis=1)              # [1, 2H]

    wcl = jnp.concatenate([jnp.zeros((1, H), jnp.float32),
                           params["wcl"].T], axis=1)                          # [1, 2H]
    return dict(w1x=w1x, w1c=w1c, b1=b1,
                w2=w2.astype(bf), b2=b2,
                wcl=wcl, bcl=params["bcl"])


def _reference_f32(x, cond, params):
    """Pure-JAX f32 reference of the PyTorch forward."""
    hc = jnp.tanh(x @ params["wc1"] + params["bc1"])
    hc = jnp.tanh(hc @ params["wc2"] + params["bc2"])
    value = hc @ params["wcl"] + params["bcl"]
    cat = jnp.concatenate([cond, x], axis=-1)
    ha = jnp.tanh(cat @ params["wa1"] + params["ba1"])
    ha = jnp.tanh(ha @ params["wa2"] + params["ba2"])
    return value, ha


def _reference_bf16(x, cond, params):
    """Reference mirroring the kernel's bf16-matmul / f32-accumulate math and
    the packed bf16 output cast."""
    bf, f32 = jnp.bfloat16, jnp.float32
    xb, cb = x.astype(bf), cond.astype(bf)
    hc = jnp.tanh(jnp.matmul(xb, params["wc1"].astype(bf),
                             preferred_element_type=f32) + params["bc1"])
    hc = jnp.tanh(jnp.matmul(hc.astype(bf), params["wc2"].astype(bf),
                             preferred_element_type=f32) + params["bc2"])
    value = jnp.sum(hc * params["wcl"].T, axis=-1, keepdims=True) + params["bcl"]
    cat = jnp.concatenate([cb, xb], axis=-1)
    ha = jnp.tanh(jnp.matmul(cat, params["wa1"].astype(bf),
                             preferred_element_type=f32) + params["ba1"])
    ha = jnp.tanh(jnp.matmul(ha.astype(bf), params["wa2"].astype(bf),
                             preferred_element_type=f32) + params["ba2"])
    return value.astype(bf).astype(f32), ha.astype(bf).astype(f32)


if __name__ == "__main__":
    seq_len, batch = 8, 2
    num_inputs, cond_size, hidden_size = 16, 8, 64

    key = jax.random.PRNGKey(0)
    kx, kc, kp = jax.random.split(key, 3)

    x = jax.random.normal(kx, (seq_len, batch, num_inputs), dtype=jnp.float32)
    condition_state = jax.random.normal(kc, (seq_len, batch, cond_size), dtype=jnp.float32)
    rnn_hxs = jnp.zeros((batch, 1), dtype=jnp.float32)   # non-recurrent: size 1

    params = make_params(kp, num_inputs, cond_size, hidden_size)
    kparams = pack_params(params, num_inputs, cond_size)

    value, hidden_actor, rnn_hxs_out = mlpbase_forward(x, rnn_hxs, condition_state, kparams)
    jax.block_until_ready((value, hidden_actor, rnn_hxs_out))

    assert value.shape == (seq_len, batch, 1)
    assert hidden_actor.shape == (seq_len, batch, hidden_size)
    assert rnn_hxs_out.shape == rnn_hxs.shape

    # tight check vs a reference that mirrors the kernel's bf16 matmul/output math
    bf_v, bf_a = _reference_bf16(x, condition_state, params)
    assert jnp.allclose(value, bf_v, atol=3e-2), "value mismatch (bf16-mirrored ref)"
    assert jnp.allclose(hidden_actor, bf_a, atol=3e-2), "actor mismatch (bf16-mirrored ref)"

    # loose sanity check vs the full-f32 reference (bf16 weights/activations/output)
    ref_v, ref_a = _reference_f32(x, condition_state, params)
    assert jnp.allclose(value, ref_v, atol=2e-1), "value mismatch (f32 ref)"
    assert jnp.allclose(hidden_actor, ref_a, atol=2e-1), "actor mismatch (f32 ref)"

    print("KERNEL_OK")
</pallas_src>

<mosaic_0001>
module attributes {stable_mosaic.version = 11 : i64} {
  func.func @_mlpbase_kernel(%arg0: i32, %arg1: memref<16x16xf32, #tpu.memory_space<vmem>>, %arg2: memref<16x8xf32, #tpu.memory_space<vmem>>, %arg3: memref<16x128xbf16, #tpu.memory_space<vmem>>, %arg4: memref<8x128xbf16, #tpu.memory_space<vmem>>, %arg5: memref<1x128xf32, #tpu.memory_space<vmem>>, %arg6: memref<128x128xbf16, #tpu.memory_space<vmem>>, %arg7: memref<1x128xf32, #tpu.memory_space<vmem>>, %arg8: memref<1x128xf32, #tpu.memory_space<vmem>>, %arg9: memref<1x1xf32, #tpu.memory_space<vmem>>, %arg10: memref<16x128xbf16, #tpu.memory_space<vmem>>) attributes {dimension_semantics = [#tpu.dimension_semantics<parallel>], iteration_bounds = array<i64: 1>, scalar_prefetch = 0 : i64, scratch_operands = 0 : i64, tpu.core_type = #tpu.core_type<tc>, window_params = [{transform_indices = @transform_0, window_bounds = array<i64: 16, 16>}, {transform_indices = @transform_1, window_bounds = array<i64: 16, 8>}, {pipeline_mode = #tpu.pipeline_mode<synchronous>, transform_indices = @transform_2, window_bounds = array<i64: 16, 128>}, {pipeline_mode = #tpu.pipeline_mode<synchronous>, transform_indices = @transform_3, window_bounds = array<i64: 8, 128>}, {pipeline_mode = #tpu.pipeline_mode<synchronous>, transform_indices = @transform_4, window_bounds = array<i64: 1, 128>}, {pipeline_mode = #tpu.pipeline_mode<synchronous>, transform_indices = @transform_5, window_bounds = array<i64: 128, 128>}, {pipeline_mode = #tpu.pipeline_mode<synchronous>, transform_indices = @transform_6, window_bounds = array<i64: 1, 128>}, {pipeline_mode = #tpu.pipeline_mode<synchronous>, transform_indices = @transform_7, window_bounds = array<i64: 1, 128>}, {pipeline_mode = #tpu.pipeline_mode<synchronous>, transform_indices = @transform_8, window_bounds = array<i64: 1, 1>}, {transform_indices = @transform_9, window_bounds = array<i64: 16, 128>}]} {
    %c0 = arith.constant 0 : index
    %c0_0 = arith.constant 0 : index
    %0 = vector.load %arg1[%c0, %c0_0] : memref<16x16xf32, #tpu.memory_space<vmem>>, vector<16x16xf32>
    %1 = arith.truncf %0 : vector<16x16xf32> to vector<16x16xbf16>
    %c0_1 = arith.constant 0 : index
    %c0_2 = arith.constant 0 : index
    %2 = vector.load %arg2[%c0_1, %c0_2] : memref<16x8xf32, #tpu.memory_space<vmem>>, vector<16x8xf32>
    %3 = arith.truncf %2 : vector<16x8xf32> to vector<16x8xbf16>
    %c0_3 = arith.constant 0 : index
    %c0_4 = arith.constant 0 : index
    %4 = vector.load %arg3[%c0_3, %c0_4] : memref<16x128xbf16, #tpu.memory_space<vmem>>, vector<16x128xbf16>
    %cst = arith.constant dense<0.000000e+00> : vector<16x128xf32>
    %5 = tpu.matmul %1, %4, %cst {dimension_numbers = #tpu.dot_dimension_numbers<[1], [0], [0], [1], [0, 0, 1, 1], [], []>} : vector<16x16xbf16>, vector<16x128xbf16>, vector<16x128xf32> -> vector<16x128xf32>
    %c0_5 = arith.constant 0 : index
    %c0_6 = arith.constant 0 : index
    %6 = vector.load %arg4[%c0_5, %c0_6] : memref<8x128xbf16, #tpu.memory_space<vmem>>, vector<8x128xbf16>
    %cst_7 = arith.constant dense<0.000000e+00> : vector<16x128xf32>
    %7 = tpu.matmul %3, %6, %cst_7 {dimension_numbers = #tpu.dot_dimension_numbers<[1], [0], [0], [1], [0, 0, 1, 1], [], []>} : vector<16x8xbf16>, vector<8x128xbf16>, vector<16x128xf32> -> vector<16x128xf32>
    %8 = arith.addf %5, %7 : vector<16x128xf32>
    %c0_8 = arith.constant 0 : index
    %c0_9 = arith.constant 0 : index
    %9 = vector.load %arg5[%c0_8, %c0_9] : memref<1x128xf32, #tpu.memory_space<vmem>>, vector<1x128xf32>
    %10 = vector.broadcast %9 : vector<1x128xf32> to vector<16x128xf32>
    %11 = arith.addf %8, %10 : vector<16x128xf32>
    %12 = math.tanh %11 : vector<16x128xf32>
    %13 = arith.truncf %12 : vector<16x128xf32> to vector<16x128xbf16>
    %c0_10 = arith.constant 0 : index
    %c0_11 = arith.constant 0 : index
    %14 = vector.load %arg6[%c0_10, %c0_11] : memref<128x128xbf16, #tpu.memory_space<vmem>>, vector<128x128xbf16>
    %cst_12 = arith.constant dense<0.000000e+00> : vector<16x128xf32>
    %15 = tpu.matmul %13, %14, %cst_12 {dimension_numbers = #tpu.dot_dimension_numbers<[1], [0], [0], [1], [0, 0, 1, 1], [], []>} : vector<16x128xbf16>, vector<128x128xbf16>, vector<16x128xf32> -> vector<16x128xf32>
    %c0_13 = arith.constant 0 : index
    %c0_14 = arith.constant 0 : index
    %16 = vector.load %arg7[%c0_13, %c0_14] : memref<1x128xf32, #tpu.memory_space<vmem>>, vector<1x128xf32>
    %17 = vector.broadcast %16 : vector<1x128xf32> to vector<16x128xf32>
    %18 = arith.addf %15, %17 : vector<16x128xf32>
    %19 = math.tanh %18 : vector<16x128xf32>
    %c0_15 = arith.constant 0 : index
    %c0_16 = arith.constant 0 : index
    %20 = vector.load %arg8[%c0_15, %c0_16] : memref<1x128xf32, #tpu.memory_space<vmem>>, vector<1x128xf32>
    %21 = vector.broadcast %20 : vector<1x128xf32> to vector<16x128xf32>
    %22 = arith.mulf %19, %21 : vector<16x128xf32>
    %cst_17 = arith.constant dense<0.000000e+00> : vector<16xf32>
    %23 = vector.multi_reduction <add>, %22, %cst_17 [1] : vector<16x128xf32> to vector<16xf32>
    %24 = vector.shape_cast %23 : vector<16xf32> to vector<16x1xf32>
    %c0_18 = arith.constant 0 : index
    %c0_19 = arith.constant 0 : index
    %25 = vector.load %arg9[%c0_18, %c0_19] : memref<1x1xf32, #tpu.memory_space<vmem>>, vector<1x1xf32>
    %26 = vector.broadcast %25 : vector<1x1xf32> to vector<16x1xf32>
    %27 = arith.addf %24, %26 : vector<16x1xf32>
    %28 = tpu.iota {dimensions = array<i32: 1>} : vector<16x128xi32>
    %c64_i32 = arith.constant 64 : i32
    %29 = vector.broadcast %c64_i32 : i32 to vector<16x128xi32>
    %30 = arith.cmpi slt, %28, %29 : vector<16x128xi32>
    %31 = vector.shape_cast %27 : vector<16x1xf32> to vector<16x1xf32>
    %32 = vector.broadcast %31 : vector<16x1xf32> to vector<16x128xf32>
    %33 = arith.select %30, %19, %32 : vector<16x128xi1>, vector<16x128xf32>
    %34 = arith.truncf %33 : vector<16x128xf32> to vector<16x128xbf16>
    %c0_20 = arith.constant 0 : index
    %c0_21 = arith.constant 0 : index
    %35 = vector.load %arg10[%c0_20, %c0_21] : memref<16x128xbf16, #tpu.memory_space<vmem>>, vector<16x128xbf16>
    tpu.vector_store %arg10[%c0_20, %c0_21], %34 {strides = array<i32>} : memref<16x128xbf16, #tpu.memory_space<vmem>>, vector<16x128xbf16>,
    return
  }
  func.func @transform_0(%arg0: i32) -> (i32, i32) {
    %c0_i32 = arith.constant 0 : i32
    %c0_i32_0 = arith.constant 0 : i32
    return %arg0, %c0_i32 : i32, i32
  }
  func.func @transform_1(%arg0: i32) -> (i32, i32) {
    %c0_i32 = arith.constant 0 : i32
    %c0_i32_0 = arith.constant 0 : i32
    return %arg0, %c0_i32 : i32, i32
  }
  func.func @transform_2(%arg0: i32) -> (i32, i32) {
    %c0_i32 = arith.constant 0 : i32
    %c0_i32_0 = arith.constant 0 : i32
    %c0_i32_1 = arith.constant 0 : i32
    return %c0_i32, %c0_i32_0 : i32, i32
  }
  func.func @transform_3(%arg0: i32) -> (i32, i32) {
    %c0_i32 = arith.constant 0 : i32
    %c0_i32_0 = arith.constant 0 : i32
    %c0_i32_1 = arith.constant 0 : i32
    return %c0_i32, %c0_i32_0 : i32, i32
  }
  func.func @transform_4(%arg0: i32) -> (i32, i32) {
    %c0_i32 = arith.constant 0 : i32
    %c0_i32_0 = arith.constant 0 : i32
    %c0_i32_1 = arith.constant 0 : i32
    return %c0_i32, %c0_i32_0 : i32, i32
  }
  func.func @transform_5(%arg0: i32) -> (i32, i32) {
    %c0_i32 = arith.constant 0 : i32
    %c0_i32_0 = arith.constant 0 : i32
    %c0_i32_1 = arith.constant 0 : i32
    return %c0_i32, %c0_i32_0 : i32, i32
  }
  func.func @transform_6(%arg0: i32) -> (i32, i32) {
    %c0_i32 = arith.constant 0 : i32
    %c0_i32_0 = arith.constant 0 : i32
    %c0_i32_1 = arith.constant 0 : i32
    return %c0_i32, %c0_i32_0 : i32, i32
  }
  func.func @transform_7(%arg0: i32) -> (i32, i32) {
    %c0_i32 = arith.constant 0 : i32
    %c0_i32_0 = arith.constant 0 : i32
    %c0_i32_1 = arith.constant 0 : i32
    return %c0_i32, %c0_i32_0 : i32, i32
  }
  func.func @transform_8(%arg0: i32) -> (i32, i32) {
    %c0_i32 = arith.constant 0 : i32
    %c0_i32_0 = arith.constant 0 : i32
    %c0_i32_1 = arith.constant 0 : i32
    return %c0_i32, %c0_i32_0 : i32, i32
  }
  func.func @transform_9(%arg0: i32) -> (i32, i32) {
    %c0_i32 = arith.constant 0 : i32
    %c0_i32_0 = arith.constant 0 : i32
    return %arg0, %c0_i32 : i32, i32
  }
}

</mosaic_0001>

<bundles_post_ra>
// kernel: tpu_custom_call.1
= control target key start
LH: loop header
LB: loop body
LE: loop exit
PB: predicated region body
PF: predicated region fallthrough
CT: control target
= control target key end

     0   :  { %s479_s0 = inlined_call_operand.vmem [shape: f32[16,16], index: 0, kind: input, shape index: {}]   ;;  %s480_s1 = inlined_call_operand.vmem [shape: f32[16,8], index: 1, kind: input, shape index: {}]   ;;  %s481_s2 = inlined_call_operand.vmem [shape: bf16[16,128], index: 2, kind: input, shape index: {}]   ;;  %s482_s3 = inlined_call_operand.vmem [shape: bf16[8,128], index: 3, kind: input, shape index: {}]   ;;  %s483_s4 = inlined_call_operand.vmem [shape: f32[1,128], index: 4, kind: input, shape index: {}]   ;;  %s484_s5 = inlined_call_operand.hbm [shape: bf16[128,128], index: 5, kind: input, shape index: {}]   ;;  %s485_s6 = inlined_call_operand.vmem [shape: f32[1,128], index: 6, kind: input, shape index: {}]   ;;  %s486_s7 = inlined_call_operand.vmem [shape: f32[1,128], index: 7, kind: input, shape index: {}]   ;;  %s487_s8 = inlined_call_operand.<no memory space> [shape: f32[1,1], index: 8, kind: input, shape index: {}]   ;;  %s488_s9 = inlined_call_operand.hbm [shape: bf16[16,128], index: 9, kind: output, shape index: {}]  }
   0x1   :  { %v14_v0 = vstv %s487_s8 }
   0x2   :  { %15 = vst [vmem:[#allocation2] sm:$0x1] %v14_v0 }
   0x3   :  { %16 = vsyncpa [#allocation4], 0 }
   0x4   :  { %17 = vsyncpa [#allocation5], 0  ;;  %s32_s13 = sshll.u32 %s484_s5, 4  ;;  %s382_s14 = smov [#allocation3]   ;;  %s33_s13 = int_to_ptr.hbm [resolvable:$true] %s32_s13 }
   0x5   :  { %s34_s15 = sshll.u32 %s382_s14, 4  ;;  %s383_s16 = smov 64   ;;  %s35_s15 = int_to_ptr.vmem [resolvable:$true] %s34_s15 }
   0x6   :  { %s384_s17 = smov 4  }
   0x7   :  { %40 = dma.hbm_to_vmem [thread:$0]  %s33_s13, 1024, %s35_s15, [#allocation4], %s383_s16, %s383_s16, %s384_s17  }
   0x8   :  { %378 = dma.done.wait [#allocation4], 1024  }
   0x9   :  { %379 = vsyncadd [#allocation4], 4294966272  ;;  %vm65_vm0 = vcmask 1043456   ;;  %v60_v1 = vld [vmem:[%s482_s3] sm:$0xf]  ;;  %v56_v5 = vld [vmem:[%s480_s1 + $0x8] sm:$0xff]  ;;  %v216_v47 = vlaneseq }
   0xa   :  { %v292_v2 = vld [vmem:[%s481_s2] sm:$0xff]  ;;  %v67_v4 = vsel %vm65_vm0, %v60_v1, 0  ;;  %v53_v7 = vld [vmem:[%s479_s0 + $0x8] sm:$0xff]  ;;  %vm61_vm1 = vcmask 64512   ;;  %vm89_vm2 = vcmask 130048   ;;  %v299_v11 = vld [vmem:[#allocation3 + $0x30] sm:$0xff] }
   0xb   :  { %v55_v3 = vld [vmem:[%s480_s1] sm:$0xff]  ;;  %76 = vmatpush.bf16.msra.mxu0 %v67_v4  ;;  %100 = vmatpush.bf16.msra.mxu1 %v292_v2  ;;  %v298_v12 = vld [vmem:[#allocation3 + $0x28] sm:$0xff]  ;;  %v295_v15 = vld [vmem:[#allocation3 + $0x10] sm:$0xff]  ;;  %v385_v40 = vmov 0   ;;  %v217_v48 = vand.u32 127, %v216_v47  ;;  %s241_s10 = sshll.u32 %s488_s9, 4  ;;  %s242_s10 = int_to_ptr.hbm [resolvable:$true] %s241_s10 }
   0xc   :  { %v52_v6 = vld [vmem:[%s479_s0] sm:$0xff]  ;;  %v57_v8 = vpack.c.bf16 %v56_v5, %v55_v3  ;;  %v294_v16 = vld [vmem:[#allocation3 + $0x8] sm:$0xff]  ;;  %311 = vset.pattern.permute.xlu1 %v385_v40  ;;  %317 = vset.pattern.permute.xlu0 %v385_v40 }
   0xd   :  { %v54_v9 = vpack.c.bf16 %v53_v7, %v52_v6  ;;  %v300_v10 = vld [vmem:[#allocation3 + $0x38] sm:$0xff]  ;;  %v297_v13 = vld [vmem:[#allocation3 + $0x20] sm:$0xff]  ;;  %vm218_vm3 = vcmp.lt.s32.totalorder %v217_v48, 64 }
   0xe   :  { %184 = vmatpush.bf16.msra.mxu2 %v300_v10  ;;  %254 = vmatmul.msk.bf16.vlgmr.msra.gmra.mxu0 %vm61_vm1, %v57_v8  ;;  %v296_v14 = vld [vmem:[#allocation3 + $0x18] sm:$0xff]  ;;  %v293_v17 = vld [vmem:[#allocation3] sm:$0xff] }
   0xf   :  { %259 = vmatmul.msk.bf16.vlgmr.msra.gmra.mxu1 %vm89_vm2, %v54_v9  ;;  %v318_v21 = vld [vmem:[%s483_s4] ss:$0 sm:$0xff] }
  0x10   :  { %v319_v30 = vld [vmem:[%s485_s6] ss:$0 sm:$0xff]  ;;  %s386_s6 = smov [#allocation6]  }
  0x11   :  { %v320_v33 = vld [vmem:[%s486_s7] ss:$0 sm:$0xff]  ;;  %s239_s7 = sshll.u32 %s386_s6, 4  ;;  %s240_s7 = int_to_ptr.vmem [resolvable:$true] %s239_s7 }
  0x12   :  { %185 = vmatpush.bf16.msra.mxu2 %v299_v11  ;;  %v321_v42 = vld [vmem:[#allocation2] ss:$0 sm:$0xff] }
  0x16   :  { %186 = vmatpush.bf16.msra.mxu2 %v298_v12 }
  0x1a   :  { %187 = vmatpush.bf16.msra.mxu2 %v297_v13 }
  0x1e   :  { %188 = vmatpush.bf16.msra.mxu2 %v296_v14 }
  0x22   :  { %189 = vmatpush.bf16.msra.mxu2 %v295_v15 }
  0x26   :  { %190 = vmatpush.bf16.msra.mxu2 %v294_v16 }
  0x2a   :  { %191 = vmatpush.bf16.msra.mxu2 %v293_v17 }
  0x8b   :  { %v78_v18 = vpop.f32.mrf.mxu0 }
  0x8c   :  { %v102_v19 = vpop.f32.mrf.mxu1 }
  0x8d   :  { %v103_v20 = vadd.f32 %v102_v19, %v78_v18 }
  0x8f   :  { %v111_v22 = vadd.f32 %v318_v21, %v103_v20 }
  0x91   :  { %322 = vtanh.f32 %v111_v22 }
  0x93   :  { %v80_v23 = vpop.f32.mrf.mxu0 }
  0x94   :  { %v104_v24 = vpop.f32.mrf.mxu1 }
  0x95   :  { %v105_v25 = vadd.f32 %v104_v24, %v80_v23 }
  0x97   :  { %v112_v26 = vadd.f32 %v318_v21, %v105_v25  ;;  %v323_v27 = vpop.eup %322 }
  0x99   :  { %324 = vtanh.f32 %v112_v26 }
  0x9f   :  { %v325_v28 = vpop.eup %324 }
  0xa0   :  { %v115_v29 = vpack.c.bf16 %v325_v28, %v323_v27 }
  0xa2   :  { %192 = vmatmul.bf16.vlgmr.msra.gmra.mxu2 %v115_v29 }
 0x125   :  { %v193_v31 = vpop.f32.mrf.mxu2 }
 0x126   :  { %v194_v32 = vadd.f32 %v319_v30, %v193_v31 }
 0x128   :  { %326 = vtanh.f32 %v194_v32 }
 0x12d   :  { %v195_v34 = vpop.f32.mrf.mxu2 }
 0x12e   :  { %v327_v35 = vpop.eup %326  ;;  %v196_v36 = vadd.f32 %v319_v30, %v195_v34 }
 0x12f   :  { %v204_v37 = vmul.f32 %v327_v35, %v320_v33 }
 0x130   :  { %328 = vtanh.f32 %v196_v36 }
 0x131   :  { %206 = vadd.xlane.f32.xlu0 %v204_v37 }
 0x136   :  { %v329_v38 = vpop.eup %328 }
 0x137   :  { %v205_v39 = vmul.f32 %v329_v38, %v320_v33 }
 0x139   :  { %208 = vadd.xlane.f32.xlu0 %v205_v39 }
 0x1a4   :  { %v207_v41 = vpop.xlane.xlu0 %206 }
 0x1a5   :  { %v214_v44 = vadd.f32 %v321_v42, %v207_v41 }
 0x1ac   :  { %v209_v43 = vpop.xlane.xlu0 %208 }
 0x1ad   :  { %v215_v45 = vadd.f32 %v321_v42, %v209_v43 }
 0x1af   :  { %v312_v46 = vpack.i.bf16 %v215_v45, %v214_v44 }
 0x1b1   :  { %313 = vperm.xlu1 %311, %v312_v46  }
 0x223   :  { %v314_v49 = vpop.permute.xlu1 %313 }
 0x224   :  { %v316_v50 = vunpack.i.h.bf16 %v314_v49  ;;  %v315_v51 = vunpack.i.l.bf16 %v314_v49 }
 0x226   :  { %v230_v52 = vsel %vm218_vm3, %v329_v38, %v316_v50  ;;  %v229_v53 = vsel %vm218_vm3, %v327_v35, %v315_v51 }
 0x227   :  { %v304_v54 = vpack.c.bf16 %v230_v52, %v229_v53 }
 0x229   :  { %305 = vst [vmem:[#allocation6] sm:$0xff] %v304_v54  }
 0x22a   :  { %247 = dma.vmem_to_hbm [thread:$0]  %s240_s7, 128, %s242_s10, [#allocation5], %s383_s16, %s383_s16, %s384_s17  }
 0x22b   :  { %380 = dma.done.wait [#allocation5], 128  }
 0x22c   :  { %381 = vsyncadd [#allocation5], 4294967168 }
 0x22d   :  { %252 = vsyncpa [#allocation4], 1 }
 0x22e   :  { %253 = vsyncpa [#allocation5], 1 }

</bundles_post_ra>
